<compile_context>
chip_gen: v7x
topology: tpu7x:2x2x1
jax: 0.10.0
libtpu: 0.0.40
codegen_flags: <defaults>
</compile_context>

<pallas_src>
import functools

import jax
import jax.numpy as jnp
from jax.experimental import pallas as pl
from jax.experimental.pallas import tpu as pltpu

_SUBLANE = 8  # f32 sublane granule


# ---------------------------------------------------------------------------
# Parameter prep (done ONCE, outside the hot path)
# ---------------------------------------------------------------------------
def prepare_params(w_i2h, b_i2h, w_i2o, b_i2o, n_i):
    """Fuse the two nn.Linear layers and pre-transpose for the kernel.

    Returns:
      w_i : (n_i, n_h + n_o)  -- rows of the fused weight that multiply `i`
      w_h : (n_h, n_h + n_o)  -- rows of the fused weight that multiply `h`
      b   : (1,   n_h + n_o)  -- fused bias row
    Column order is [h-outputs | o-outputs]; kernels and wrappers rely on it.
    """
    # (n_h + n_o, n_i + n_h) -> transpose -> (n_i + n_h, n_h + n_o)
    w_fused = jnp.concatenate([w_i2h, w_i2o], axis=0).T.astype(jnp.float32)
    w_i = w_fused[:n_i]                       # (n_i, N)
    w_h = w_fused[n_i:]                       # (n_h, N)
    b = jnp.concatenate([b_i2h, b_i2o]).reshape(1, -1).astype(jnp.float32)
    return w_i, w_h, b


def _pad_rows(x, rows):
    """Zero-pad the batch (second-to-last) dim up to `rows` sublanes."""
    pad = rows - x.shape[-2]
    if pad == 0:
        return x
    cfg = [(0, 0)] * x.ndim
    cfg[-2] = (0, pad)
    return jnp.pad(x, cfg)


# ---------------------------------------------------------------------------
# Single-step cell kernel (exact module forward)
# ---------------------------------------------------------------------------
def _rnn_cell_kernel(i_ref, h_ref, wi_ref, wh_ref, b_ref, out_ref):
    # [i | h] @ [W_i ; W_h] + b, done as a K-split sum so no HBM concat of
    # (i, h) is needed.  Single bias add + single tanh + one lane-dense store.
    pre = (jnp.dot(i_ref[...], wi_ref[...], preferred_element_type=jnp.float32)
           + jnp.dot(h_ref[...], wh_ref[...], preferred_element_type=jnp.float32)
           + b_ref[...])
    out_ref[...] = jnp.tanh(pre).astype(out_ref.dtype)        # (Bp, n_h + n_o)


def rnn_forward(i, h, params, n_h):
    """Pallas implementation of RNN.forward(i, h) -> (o, h_new)."""
    w_i, w_h, b = params
    B = i.shape[0]
    N = b.shape[1]
    n_o = N - n_h

    # Pad batch to a full sublane granule (no-op if already aligned).
    Bp = max(_SUBLANE, -(-B // _SUBLANE) * _SUBLANE)
    i_p = _pad_rows(i.astype(jnp.float32), Bp)
    h_p = _pad_rows(h.astype(jnp.float32), Bp)

    vmem = lambda: pl.BlockSpec(memory_space=pltpu.VMEM)
    out = pl.pallas_call(
        _rnn_cell_kernel,
        out_shape=jax.ShapeDtypeStruct((Bp, N), jnp.float32),
        in_specs=[vmem() for _ in range(5)],
        out_specs=vmem(),
    )(i_p, h_p, w_i, w_h, b)

    h_new = out[:B, :n_h]
    o = out[:B, n_h:]
    return o, h_new


# ---------------------------------------------------------------------------
# Fused time-loop kernel: whole scan inside one pallas_call
# ---------------------------------------------------------------------------
def _rnn_seq_kernel(h0_ref, x_ref, wi_ref, wh_ref, b_ref,
                    act_ref, hN_ref, h_sc, *, n_h):
    t = pl.program_id(0)

    @pl.when(t == 0)
    def _():
        h_sc[...] = h0_ref[...]                               # init carry

    pre = (jnp.dot(x_ref[0], wi_ref[...], preferred_element_type=jnp.float32)
           + jnp.dot(h_sc[...], wh_ref[...], preferred_element_type=jnp.float32)
           + b_ref[...])
    act = jnp.tanh(pre)                                       # (Bp, n_h + n_o)

    h_sc[...] = act[:, :n_h]                                  # carry stays in VMEM
    act_ref[0] = act.astype(act_ref.dtype)                    # lane-dense per-step slab

    @pl.when(t == pl.num_programs(0) - 1)
    def _():
        hN_ref[...] = h_sc[...].astype(hN_ref.dtype)          # final hidden state


def rnn_forward_sequence(x_seq, h0, params, n_h):
    """Run the RNN cell over x_seq (T, B, n_i) inside a single pallas_call.

    Weights/bias/h0 are DMA'd once and stay VMEM-resident; the hidden state is
    carried across grid steps in VMEM scratch.  Returns (o_seq, h_T).
    """
    w_i, w_h, b = params
    T, B, n_i = x_seq.shape
    N = b.shape[1]
    n_o = N - n_h

    Bp = max(_SUBLANE, -(-B // _SUBLANE) * _SUBLANE)
    x_p = _pad_rows(x_seq.astype(jnp.float32), Bp)            # (T, Bp, n_i)
    h0_p = _pad_rows(h0.astype(jnp.float32), Bp)              # (Bp, n_h)

    resident = lambda t: (0, 0)                               # DMA'd once, stays in VMEM

    act_seq, h_T = pl.pallas_call(
        functools.partial(_rnn_seq_kernel, n_h=n_h),
        out_shape=(
            jax.ShapeDtypeStruct((T, Bp, N), jnp.float32),    # per-step [h|o] slab
            jax.ShapeDtypeStruct((Bp, n_h), jnp.float32),     # final hidden
        ),
        grid_spec=pltpu.PrefetchScalarGridSpec(
            num_scalar_prefetch=0,
            grid=(T,),
            in_specs=[
                pl.BlockSpec((Bp, n_h), resident),                 # h0
                pl.BlockSpec((1, Bp, n_i), lambda t: (t, 0, 0)),   # x_t (streamed)
                pl.BlockSpec((n_i, N), resident),                  # W_i
                pl.BlockSpec((n_h, N), resident),                  # W_h
                pl.BlockSpec((1, N), resident),                    # b
            ],
            out_specs=(
                pl.BlockSpec((1, Bp, N), lambda t: (t, 0, 0)),     # act_t
                pl.BlockSpec((Bp, n_h), resident),                 # h_T (written once)
            ),
            scratch_shapes=[pltpu.VMEM((Bp, n_h), jnp.float32)],   # hidden carry
        ),
        compiler_params=pltpu.CompilerParams(
            dimension_semantics=("arbitrary",)),               # time is sequential
    )(h0_p, x_p, w_i, w_h, b)

    o_seq = act_seq[:, :B, n_h:]                               # (T, B, n_o)
    return o_seq, h_T[:B]


# ---------------------------------------------------------------------------
# Example / self-check
# ---------------------------------------------------------------------------
def _pytorch_linear_init(key, out_features, in_features):
    """Deterministic stand-in for nn.Linear default init: U(-1/sqrt(fan_in), +)."""
    kw, kb = jax.random.split(key)
    bound = 1.0 / jnp.sqrt(jnp.float32(in_features))
    w = jax.random.uniform(kw, (out_features, in_features), jnp.float32,
                           minval=-bound, maxval=bound)
    b = jax.random.uniform(kb, (out_features,), jnp.float32,
                           minval=-bound, maxval=bound)
    return w, b


if __name__ == "__main__":
    # Small shapes consistent with the module: batch=4, n_i=16, n_h=32, n_o=8.
    B, n_i, n_h, n_o, T = 4, 16, 32, 8, 8

    key = jax.random.PRNGKey(0)
    k_x, k_h, k_w1, k_w2, k_seq = jax.random.split(key, 5)

    x = jax.random.normal(k_x, (B, n_i), jnp.float32)
    h0 = jax.random.normal(k_h, (B, n_h), jnp.float32)
    x_seq = jax.random.normal(k_seq, (T, B, n_i), jnp.float32)

    w_i2h, b_i2h = _pytorch_linear_init(k_w1, n_h, n_i + n_h)
    w_i2o, b_i2o = _pytorch_linear_init(k_w2, n_o, n_i + n_h)

    # One-time parameter prep (fusion, transpose, casts) hoisted out of the hot path.
    params = prepare_params(w_i2h, b_i2h, w_i2o, b_i2o, n_i)

    # ---- single-step cell (exact module forward) ----
    o, h1 = rnn_forward(x, h0, params, n_h)
    o = jax.block_until_ready(o)
    h1 = jax.block_until_ready(h1)

    ih = jnp.concatenate([x, h0], axis=1)
    h_ref = jnp.tanh(ih @ w_i2h.T + b_i2h)
    o_ref = jnp.tanh(ih @ w_i2o.T + b_i2o)
    assert o.shape == (B, n_o) and h1.shape == (B, n_h)
    assert jnp.allclose(o, o_ref, atol=1e-5), "single-step output mismatch"
    assert jnp.allclose(h1, h_ref, atol=1e-5), "single-step hidden mismatch"

    # ---- fused time loop (cell iterated over a sequence inside one kernel) ----
    o_seq, h_T = rnn_forward_sequence(x_seq, h0, params, n_h)
    o_seq = jax.block_until_ready(o_seq)
    h_T = jax.block_until_ready(h_T)

    def _step(h, x_t):
        ih_t = jnp.concatenate([x_t, h], axis=1)
        h_n = jnp.tanh(ih_t @ w_i2h.T + b_i2h)
        o_t = jnp.tanh(ih_t @ w_i2o.T + b_i2o)
        return h_n, o_t

    h_ref_T, o_ref_seq = jax.lax.scan(_step, h0, x_seq)
    assert o_seq.shape == (T, B, n_o) and h_T.shape == (B, n_h)
    assert jnp.allclose(o_seq, o_ref_seq, atol=1e-4), "sequence output mismatch"
    assert jnp.allclose(h_T, h_ref_T, atol=1e-4), "sequence hidden mismatch"

    print("KERNEL_OK")
</pallas_src>

<mosaic_0001>
module attributes {stable_mosaic.version = 11 : i64} {
  func.func @_rnn_cell_kernel(%arg0: memref<8x16xf32, #tpu.memory_space<vmem>>, %arg1: memref<8x32xf32, #tpu.memory_space<vmem>>, %arg2: memref<16x40xf32, #tpu.memory_space<vmem>>, %arg3: memref<32x40xf32, #tpu.memory_space<vmem>>, %arg4: memref<1x40xf32, #tpu.memory_space<vmem>>, %arg5: memref<8x40xf32, #tpu.memory_space<vmem>>) attributes {dimension_semantics = [], scalar_prefetch = 0 : i64, scratch_operands = 0 : i64, tpu.core_type = #tpu.core_type<tc>} {
    %c0 = arith.constant 0 : index
    %c0_0 = arith.constant 0 : index
    %0 = vector.load %arg0[%c0, %c0_0] : memref<8x16xf32, #tpu.memory_space<vmem>>, vector<8x16xf32>
    %c0_1 = arith.constant 0 : index
    %c0_2 = arith.constant 0 : index
    %1 = vector.load %arg2[%c0_1, %c0_2] : memref<16x40xf32, #tpu.memory_space<vmem>>, vector<16x40xf32>
    %cst = arith.constant dense<0.000000e+00> : vector<8x40xf32>
    %2 = tpu.matmul %0, %1, %cst {dimension_numbers = #tpu.dot_dimension_numbers<[1], [0], [0], [1], [0, 0, 1, 1], [], []>} : vector<8x16xf32>, vector<16x40xf32>, vector<8x40xf32> -> vector<8x40xf32>
    %c0_3 = arith.constant 0 : index
    %c0_4 = arith.constant 0 : index
    %3 = vector.load %arg1[%c0_3, %c0_4] : memref<8x32xf32, #tpu.memory_space<vmem>>, vector<8x32xf32>
    %c0_5 = arith.constant 0 : index
    %c0_6 = arith.constant 0 : index
    %4 = vector.load %arg3[%c0_5, %c0_6] : memref<32x40xf32, #tpu.memory_space<vmem>>, vector<32x40xf32>
    %cst_7 = arith.constant dense<0.000000e+00> : vector<8x40xf32>
    %5 = tpu.matmul %3, %4, %cst_7 {dimension_numbers = #tpu.dot_dimension_numbers<[1], [0], [0], [1], [0, 0, 1, 1], [], []>} : vector<8x32xf32>, vector<32x40xf32>, vector<8x40xf32> -> vector<8x40xf32>
    %6 = arith.addf %2, %5 : vector<8x40xf32>
    %c0_8 = arith.constant 0 : index
    %c0_9 = arith.constant 0 : index
    %7 = vector.load %arg4[%c0_8, %c0_9] : memref<1x40xf32, #tpu.memory_space<vmem>>, vector<1x40xf32>
    %8 = vector.broadcast %7 : vector<1x40xf32> to vector<8x40xf32>
    %9 = arith.addf %6, %8 : vector<8x40xf32>
    %10 = math.tanh %9 : vector<8x40xf32>
    %c0_10 = arith.constant 0 : index
    %c0_11 = arith.constant 0 : index
    %11 = vector.load %arg5[%c0_10, %c0_11] : memref<8x40xf32, #tpu.memory_space<vmem>>, vector<8x40xf32>
    tpu.vector_store %arg5[%c0_10, %c0_11], %10 {strides = array<i32>} : memref<8x40xf32, #tpu.memory_space<vmem>>, vector<8x40xf32>,
    return
  }
}

</mosaic_0001>

<bundles_post_ra>
// kernel: tpu_custom_call.1
= control target key start
LH: loop header
LB: loop body
LE: loop exit
PB: predicated region body
PF: predicated region fallthrough
CT: control target
= control target key end

     0   :  { %10 = vsyncpa [#allocation3], 0  ;;  %s527_s0 = inlined_call_operand.hbm [shape: f32[8,16], index: 0, kind: input, shape index: {}]   ;;  %s528_s1 = inlined_call_operand.hbm [shape: f32[8,32], index: 1, kind: input, shape index: {}]   ;;  %s529_s2 = inlined_call_operand.hbm [shape: f32[16,40], index: 2, kind: input, shape index: {}]   ;;  %s530_s3 = inlined_call_operand.hbm [shape: f32[32,40], index: 3, kind: input, shape index: {}]   ;;  %s531_s4 = inlined_call_operand.vmem [shape: f32[1,40], index: 4, kind: input, shape index: {}]   ;;  %s532_s5 = inlined_call_operand.hbm [shape: f32[8,40], index: 5, kind: output, shape index: {}]  }
   0x1   :  { %11 = vsyncpa [#allocation6], 0 }
   0x2   :  { %12 = vsyncpa [#allocation9], 0 }
   0x3   :  { %13 = vsyncpa [#allocation4], 0  ;;  %s424_s18 = smov [#allocation5]   ;;  %s425_s20 = smov [#allocation2]  }
   0x4   :  { %s30_s19 = sshll.u32 %s424_s18, 4  ;;  %s20_s21 = sshll.u32 %s425_s20, 4  ;;  %s31_s19 = int_to_ptr.vmem [resolvable:$true] %s30_s19  ;;  %s21_s21 = int_to_ptr.vmem [resolvable:$true] %s20_s21 }
   0x5   :  { %s306_s24 = scalar_lea.hbm %s528_s1, 128 }
   0x6   :  { %p307_p0 = scmp.ne.s32.totalorder %s528_s1, %s306_s24  ;;  %p310_p1 = scmp.lt.u32.totalorder %s306_s24, %s528_s1 }
   0x8   :  { %p312_p2 = pnand %p310_p1, %p307_p0 }
   0xa   :  { %315 = shalt.err (!%p312_p2)
}
   0xb   :  { %s316_s29 = scalar_lea.vmem %s31_s19, 128  ;;  %p321_p4 = scmp.lt.s32.totalorder %s31_s19, %s31_s19 }
   0xc   :  { %p317_p3 = scmp.ne.s32.totalorder %s31_s19, %s316_s29  ;;  %p322_p5 = scmp.lt.s32.totalorder %s316_s29, %s316_s29 }
   0xe   :  { %p323_p6 = por %p322_p5, %p321_p4 }
  0x10   :  { %p324_p7 = pnand %p323_p6, %p317_p3 }
  0x12   :  { %327 = shalt.err (!%p324_p7)
}
  0x13   :  { %33 = dma.hbm_to_vmem [thread:$0]  %s528_s1, 128, %s31_s19, [#allocation6]  }
  0x14   :  { %s328_s9 = scalar_lea.hbm %s527_s0, 128 }
  0x15   :  { %p329_p8 = scmp.ne.s32.totalorder %s527_s0, %s328_s9  ;;  %p332_p9 = scmp.lt.u32.totalorder %s328_s9, %s527_s0 }
  0x17   :  { %p334_p10 = pnand %p332_p9, %p329_p8 }
  0x19   :  { %337 = shalt.err (!%p334_p10)
}
  0x1a   :  { %s338_s14 = scalar_lea.vmem %s21_s21, 128  ;;  %p343_p12 = scmp.lt.s32.totalorder %s21_s21, %s21_s21 }
  0x1b   :  { %p339_p11 = scmp.ne.s32.totalorder %s21_s21, %s338_s14  ;;  %p344_p13 = scmp.lt.s32.totalorder %s338_s14, %s338_s14 }
  0x1d   :  { %p345_p0 = por %p344_p13, %p343_p12 }
  0x1f   :  { %p346_p1 = pnand %p345_p0, %p339_p11 }
  0x21   :  { %349 = shalt.err (!%p346_p1)
}
  0x22   :  { %23 = dma.hbm_to_vmem [thread:$0]  %s527_s0, 128, %s21_s21, [#allocation3]  }
  0x23   :  { %s426_s16 = smov [#allocation7]   ;;  %s350_s20 = scalar_lea.hbm %s529_s2, 256 }
  0x24   :  { %s39_s17 = sshll.u32 %s426_s16, 4  ;;  %p351_p2 = scmp.ne.s32.totalorder %s529_s2, %s350_s20  ;;  %s40_s17 = int_to_ptr.vmem [resolvable:$true] %s39_s17 }
  0x25   :  { %p354_p3 = scmp.lt.u32.totalorder %s350_s20, %s529_s2 }
  0x27   :  { %p356_p4 = pnand %p354_p3, %p351_p2 }
  0x29   :  { %359 = shalt.err (!%p356_p4)
}
  0x2a   :  { %s360_s26 = scalar_lea.vmem %s40_s17, 256  ;;  %p365_p6 = scmp.lt.s32.totalorder %s40_s17, %s40_s17 }
  0x2b   :  { %p361_p5 = scmp.ne.s32.totalorder %s40_s17, %s360_s26  ;;  %p366_p7 = scmp.lt.s32.totalorder %s360_s26, %s360_s26 }
  0x2d   :  { %p367_p8 = por %p366_p7, %p365_p6 }
  0x2f   :  { %p368_p9 = pnand %p367_p8, %p361_p5 }
  0x31   :  { %371 = shalt.err (!%p368_p9)
}
  0x32   :  { %s427_s0 = smov 128   ;;  %s428_s21 = smov 8  }
  0x33   :  { %45 = dma.hbm_to_vmem [thread:$0]  %s529_s2, 256, %s40_s17, [#allocation6], %s427_s0, %s427_s0, %s428_s21  }
  0x34   :  { %s429_s29 = smov [#allocation8]   ;;  %s372_s8 = scalar_lea.hbm %s530_s3, 512 }
  0x35   :  { %s51_s30 = sshll.u32 %s429_s29, 4  ;;  %p373_p10 = scmp.ne.s32.totalorder %s530_s3, %s372_s8  ;;  %s52_s30 = int_to_ptr.vmem [resolvable:$true] %s51_s30 }
  0x36   :  { %p376_p11 = scmp.lt.u32.totalorder %s372_s8, %s530_s3 }
  0x38   :  { %p378_p12 = pnand %p376_p11, %p373_p10 }
  0x3a   :  { %381 = shalt.err (!%p378_p12)
}
  0x3b   :  { %s382_s13 = scalar_lea.vmem %s52_s30, 512  ;;  %p387_p0 = scmp.lt.s32.totalorder %s52_s30, %s52_s30 }
  0x3c   :  { %p383_p13 = scmp.ne.s32.totalorder %s52_s30, %s382_s13  ;;  %p388_p1 = scmp.lt.s32.totalorder %s382_s13, %s382_s13 }
  0x3e   :  { %p389_p2 = por %p388_p1, %p387_p0 }
  0x40   :  { %p390_p3 = pnand %p389_p2, %p383_p13 }
  0x42   :  { %393 = shalt.err (!%p390_p3)
}
  0x43   :  { %57 = dma.hbm_to_vmem [thread:$0]  %s530_s3, 512, %s52_s30, [#allocation9], %s427_s0, %s427_s0, %s428_s21  }
  0x44   :  { %416 = dma.done.wait [#allocation3], 128  }
  0x45   :  { %417 = vsyncadd [#allocation3], 4294967168 }
  0x46   :  { %418 = dma.done.wait [#allocation6], 384  }
  0x47   :  { %419 = vsyncadd [#allocation6], 4294966912 }
  0x48   :  { %420 = dma.done.wait [#allocation9], 512  }
  0x49   :  { %421 = vsyncadd [#allocation9], 4294966784  ;;  %v430_v0 = vmov 0.0|0.0   ;;  %vm431_vm0 = vmmov 0   ;;  %v432_v1 = vmov 0.0   ;;  %v76_v2 = vld [vmem:[#allocation8] sm:$0xff] }
  0x4a   :  { %285 = vmatprep.subr.bf16.mxu0 %v430_v0  ;;  %291 = vmatprep.subr.bf16.mxu1 %v430_v0  ;;  %v77_v3 = vld [vmem:[#allocation8 + $0x8] sm:$0xff]  ;;  %v73_v4 = vld [vmem:[#allocation7] sm:$0xff]  ;;  %v74_v6 = vld [vmem:[#allocation7 + $0x8] sm:$0xff]  ;;  %vm154_vm1 = vcmask 130048   ;;  %vm80_vm2 = vcmask 261120   ;;  %s433_s15 = smov [#allocation10]  }
  0x4b   :  { %282 = vmatprep.mubr.msk.f32.mxu1 %vm431_vm0, %v432_v1  ;;  %275 = vmatprep.mubr.msk.f32.mxu0 %vm431_vm0, %v432_v1  ;;  %v286_v5 = vpack.c.bf16 %v77_v3, %v76_v2  ;;  %v78_v7 = vld [vmem:[#allocation8 + $0x10] sm:$0xff]  ;;  %v79_v8 = vld [vmem:[#allocation8 + $0x18] sm:$0xff]  ;;  %v292_v9 = vpack.c.bf16 %v74_v6, %v73_v4  ;;  %v72_v11 = vld [vmem:[#allocation2] sm:$0xff]  ;;  %s245_s16 = sshll.u32 %s433_s15, 4  ;;  %vm237_vm3 = vcmask 326656   ;;  %s246_s16 = int_to_ptr.vmem [resolvable:$true] %s245_s16 }
  0x4c   :  { %v289_v10 = vpack.c.bf16 %v79_v8, %v78_v7  ;;  %v75_v12 = vld [vmem:[#allocation5] sm:$0xff]  ;;  %v258_v16 = vld [vmem:[%s531_s4] ss:$0 sm:$0xff]  ;;  %s394_s17 = scalar_lea.vmem %s246_s16, 128  ;;  %p399_p5 = scmp.lt.s32.totalorder %s246_s16, %s246_s16 }
  0x4d   :  { %287 = vmatpush3.bf16.msra.mxu0 %v286_v5  ;;  %293 = vmatpush3.bf16.msra.mxu1 %v292_v9  ;;  %p395_p4 = scmp.ne.s32.totalorder %s246_s16, %s394_s17  ;;  %p400_p6 = scmp.lt.s32.totalorder %s394_s17, %s394_s17 }
  0x4e   :  { %288 = vmatprep.subr.bf16.mxu0 %v430_v0 }
  0x4f   :  { %p401_p7 = por %p400_p6, %p399_p5 }
  0x50   :  { %283 = vmatmul.mubr.msk.f32.vlgmr.msra.gmra.mrb[0].mxu1 %vm154_vm1, %v72_v11 }
  0x51   :  { %290 = vmatpush3.bf16.msra.mxu0 %v289_v10  ;;  %p402_p8 = pnand %p401_p7, %p395_p4 }
  0x54   :  { %276 = vmatmul.mubr.msk.f32.vlgmr.msra.gmra.mrb[0].mxu0 %vm80_vm2, %v75_v12 }
 0x123   :  { %v224_v13 = vpop.f32.mrb[0].mxu1 }
 0x124   :  { %v284_v14 = vpop.f32.mrb[1].mxu1 }
 0x127   :  { %v150_v15 = vpop.f32.mrb[0].mxu0 }
 0x128   :  { %v225_v17 = vadd.f32 %v224_v13, %v150_v15  ;;  %v277_v18 = vpop.f32.mrb[1].mxu0 }
 0x12a   :  { %v235_v19 = vadd.f32 %v258_v16, %v225_v17 }
 0x12c   :  { %304 = vtanh.f32 %v235_v19 }
 0x136   :  { %v305_v20 = vpop.eup %304 }
 0x137   :  { %238 = vst.msk [vmem:[#allocation10] sm:$0xff] %vm237_vm3, %v305_v20 }
 0x138   :  { %405 = shalt.err (!%p402_p8)
}
 0x139   :  { %s406_s4 = scalar_lea.hbm %s532_s5, 128 }
 0x13a   :  { %p407_p9 = scmp.ne.s32.totalorder %s532_s5, %s406_s4  ;;  %p410_p10 = scmp.lt.u32.totalorder %s406_s4, %s532_s5 }
 0x13c   :  { %p412_p11 = pnand %p410_p10, %p407_p9 }
 0x13e   :  { %415 = shalt.err (!%p412_p11)
}
 0x13f   :  { %248 = dma.vmem_to_hbm [thread:$0]  %s246_s16, 128, %s532_s5, [#allocation4]  }
 0x140   :  { %422 = dma.done.wait [#allocation4], 128  }
 0x141   :  { %423 = vsyncadd [#allocation4], 4294967168 }
 0x142   :  { %252 = vsyncpa [#allocation3], 1 }
 0x143   :  { %253 = vsyncpa [#allocation6], 1 }
 0x144   :  { %254 = vsyncpa [#allocation9], 1 }
 0x145   :  { %255 = vsyncpa [#allocation4], 1 }

</bundles_post_ra>
